<compile_context>
chip_gen: v7x
topology: tpu7x:2x2x1
jax: 0.10.0
libtpu: 0.0.40
codegen_flags: <defaults>
</compile_context>

<pallas_src>
import functools

import jax
import jax.numpy as jnp
from jax.experimental import pallas as pl
from jax.experimental.pallas import tpu as pltpu

H1 = 128        # fc1 out
H2 = 64         # fc2 out (logical)
H2_PAD = 128    # fc2 out padded to a full lane width


def _round_up(n, m):
    return (n + m - 1) // m * m


def energy_dnn_kernel(x_ref, w1_ref, b1_ref, w2_ref, b2_ref, w3_ref, b3_ref, o_ref):
    # fc1: [TB, D] @ [D, 128] on the MXU (bf16 operands, f32 accumulation).
    h1 = jnp.dot(x_ref[...], w1_ref[...], preferred_element_type=jnp.float32)
    h1 = jnp.maximum(h1 + b1_ref[...], 0.0)

    # fc2: [TB, 128] @ [128, 128] (output columns 64..127 are zero-padded).
    h2 = jnp.dot(h1.astype(jnp.bfloat16), w2_ref[...],
                 preferred_element_type=jnp.float32)
    h2 = jnp.maximum(h2 + b2_ref[...], 0.0)

    # fc3: N=1 -> keep it off the MXU.  Broadcast multiply on the VPU + lane
    # reduction on the XLU; padded lanes contribute exactly zero.
    o = jnp.sum(h2 * w3_ref[...], axis=-1, keepdims=True)
    o_ref[...] = o + b3_ref[0, 0]           # b3 is a scalar read from SMEM


def prepare_params(params):
    """PyTorch-style f32 params ([in,out] weights, [1,out] biases) -> kernel layout."""
    w1, b1, w2, b2, w3, b3 = params
    w1k = w1.astype(jnp.bfloat16)                                           # [D, 128]
    b1k = b1.astype(jnp.float32)                                            # [1, 128]
    w2k = jnp.zeros((H1, H2_PAD), jnp.bfloat16).at[:, :H2].set(
        w2.astype(jnp.bfloat16))                                            # [128, 128]
    b2k = jnp.zeros((1, H2_PAD), jnp.float32).at[:, :H2].set(b2)            # [1, 128]
    # fc3 weight as an f32 row (used on the VPU, not the MXU), padded to 128 lanes.
    w3k = jnp.zeros((1, H2_PAD), jnp.float32).at[:, :H2].set(w3[:, 0][None, :])
    b3k = b3.reshape(1, 1).astype(jnp.float32)                              # [1, 1]
    return w1k, b1k, w2k, b2k, w3k, b3k


@functools.partial(jax.jit, static_argnames=("tb",))
def energy_dnn_forward(x, kparams, *, tb=1024):
    w1, b1, w2, b2, w3, b3 = kparams
    B, D = x.shape
    TB = min(tb, _round_up(B, 8))          # batch tile (sublane-aligned)
    Bp = _round_up(B, TB)

    xk = x.astype(jnp.bfloat16)
    if Bp != B:
        xk = jnp.pad(xk, ((0, Bp - B), (0, 0)))

    out = pl.pallas_call(
        energy_dnn_kernel,
        out_shape=jax.ShapeDtypeStruct((Bp, 1), jnp.float32),
        grid=(Bp // TB,),
        in_specs=[
            # x tile streams over the batch grid axis (double-buffered by Pallas).
            # If DMA is still exposed at large B, add pipeline_mode=pl.Buffered(3).
            pl.BlockSpec((TB, D), lambda i: (i, 0)),
            # Weights / biases: same block every step -> stay VMEM-resident.
            pl.BlockSpec((D, H1), lambda i: (0, 0)),
            pl.BlockSpec((1, H1), lambda i: (0, 0)),
            pl.BlockSpec((H1, H2_PAD), lambda i: (0, 0)),
            pl.BlockSpec((1, H2_PAD), lambda i: (0, 0)),
            pl.BlockSpec((1, H2_PAD), lambda i: (0, 0)),
            # Scalar fc3 bias in SMEM (avoids an (8,128)-padded VMEM tile + DMA).
            pl.BlockSpec(memory_space=pltpu.MemorySpace.SMEM),
        ],
        out_specs=pl.BlockSpec((TB, 1), lambda i: (i, 0)),
        compiler_params=pltpu.CompilerParams(
            dimension_semantics=("parallel",),   # megacore sharding on v7x; no-op v5e/v6e
        ),
    )(xk, w1, b1, w2, b2, w3, b3)
    return out[:B]


def init_params(key, input_size):
    # Deterministic init mirroring PyTorch Linear's U(-1/sqrt(fan_in), 1/sqrt(fan_in)).
    dims = [(input_size, H1), (H1, H2), (H2, 1)]
    params = []
    for (fan_in, fan_out) in dims:
        key, kw, kb = jax.random.split(key, 3)
        bound = 1.0 / jnp.sqrt(jnp.float32(fan_in))
        w = jax.random.uniform(kw, (fan_in, fan_out), jnp.float32, -bound, bound)
        b = jax.random.uniform(kb, (1, fan_out), jnp.float32, -bound, bound)
        params += [w, b]
    return tuple(params)


def reference_forward_f32(x, params):
    w1, b1, w2, b2, w3, b3 = params
    h1 = jnp.maximum(x @ w1 + b1, 0.0)
    h2 = jnp.maximum(h1 @ w2 + b2, 0.0)
    return h2 @ w3 + b3


def reference_forward_matched(x, params):
    # Same mixed precision as the kernel: bf16 operands, f32 accumulation,
    # fc3 as an elementwise multiply + reduction.
    w1, b1, w2, b2, w3, b3 = params
    h1 = jnp.dot(x.astype(jnp.bfloat16), w1.astype(jnp.bfloat16),
                 preferred_element_type=jnp.float32) + b1
    h1 = jnp.maximum(h1, 0.0)
    h2 = jnp.dot(h1.astype(jnp.bfloat16), w2.astype(jnp.bfloat16),
                 preferred_element_type=jnp.float32) + b2
    h2 = jnp.maximum(h2, 0.0)
    return jnp.sum(h2 * w3[:, 0][None, :], axis=-1, keepdims=True) + b3


if __name__ == "__main__":
    key = jax.random.PRNGKey(0)
    key, kx = jax.random.split(key)
    input_size = 32
    batch = 200   # not a multiple of the tile -> exercises padding + multi-step grid
    x = jax.random.normal(kx, (batch, input_size), jnp.float32)

    params = init_params(key, input_size)
    kparams = prepare_params(params)

    out = energy_dnn_forward(x, kparams, tb=128)   # grid = (2,)
    out = jax.block_until_ready(out)
    assert out.shape == (batch, 1)

    ref_matched = reference_forward_matched(x, params)
    assert jnp.allclose(out, ref_matched, atol=1e-4, rtol=1e-4), (
        float(jnp.max(jnp.abs(out - ref_matched))))

    ref_f32 = reference_forward_f32(x, params)
    assert jnp.allclose(out, ref_f32, atol=5e-2, rtol=5e-2), (
        float(jnp.max(jnp.abs(out - ref_f32))))

    print("KERNEL_OK")
</pallas_src>

<mosaic_0001>
module attributes {stable_mosaic.version = 11 : i64} {
  func.func @energy_dnn_kernel(%arg0: i32, %arg1: memref<128x32xbf16, #tpu.memory_space<vmem>>, %arg2: memref<32x128xbf16, #tpu.memory_space<vmem>>, %arg3: memref<1x128xf32, #tpu.memory_space<vmem>>, %arg4: memref<128x128xbf16, #tpu.memory_space<vmem>>, %arg5: memref<1x128xf32, #tpu.memory_space<vmem>>, %arg6: memref<1x128xf32, #tpu.memory_space<vmem>>, %arg7: memref<1x1xf32, #tpu.memory_space<smem>>, %arg8: memref<128x1xf32, #tpu.memory_space<vmem>>) attributes {dimension_semantics = [#tpu.dimension_semantics<parallel>], iteration_bounds = array<i64: 2>, scalar_prefetch = 0 : i64, scratch_operands = 0 : i64, tpu.core_type = #tpu.core_type<tc>, window_params = [{transform_indices = @transform_0, window_bounds = array<i64: 128, 32>}, {pipeline_mode = #tpu.pipeline_mode<synchronous>, transform_indices = @transform_1, window_bounds = array<i64: 32, 128>}, {pipeline_mode = #tpu.pipeline_mode<synchronous>, transform_indices = @transform_2, window_bounds = array<i64: 1, 128>}, {pipeline_mode = #tpu.pipeline_mode<synchronous>, transform_indices = @transform_3, window_bounds = array<i64: 128, 128>}, {pipeline_mode = #tpu.pipeline_mode<synchronous>, transform_indices = @transform_4, window_bounds = array<i64: 1, 128>}, {pipeline_mode = #tpu.pipeline_mode<synchronous>, transform_indices = @transform_5, window_bounds = array<i64: 1, 128>}, {transform_indices = @transform_6, window_bounds = array<i64: 1, 1>}, {transform_indices = @transform_7, window_bounds = array<i64: 128, 1>}]} {
    %c0 = arith.constant 0 : index
    %c0_0 = arith.constant 0 : index
    %0 = vector.load %arg1[%c0, %c0_0] : memref<128x32xbf16, #tpu.memory_space<vmem>>, vector<128x32xbf16>
    %c0_1 = arith.constant 0 : index
    %c0_2 = arith.constant 0 : index
    %1 = vector.load %arg2[%c0_1, %c0_2] : memref<32x128xbf16, #tpu.memory_space<vmem>>, vector<32x128xbf16>
    %cst = arith.constant dense<0.000000e+00> : vector<128x128xf32>
    %2 = tpu.matmul %0, %1, %cst {dimension_numbers = #tpu.dot_dimension_numbers<[1], [0], [0], [1], [0, 0, 1, 1], [], []>} : vector<128x32xbf16>, vector<32x128xbf16>, vector<128x128xf32> -> vector<128x128xf32>
    %c0_3 = arith.constant 0 : index
    %c0_4 = arith.constant 0 : index
    %3 = vector.load %arg3[%c0_3, %c0_4] : memref<1x128xf32, #tpu.memory_space<vmem>>, vector<1x128xf32>
    %4 = vector.broadcast %3 : vector<1x128xf32> to vector<128x128xf32>
    %5 = arith.addf %2, %4 : vector<128x128xf32>
    %cst_5 = arith.constant 0.000000e+00 : f32
    %6 = vector.broadcast %cst_5 : f32 to vector<128x128xf32>
    %7 = arith.maximumf %5, %6 : vector<128x128xf32>
    %8 = arith.truncf %7 : vector<128x128xf32> to vector<128x128xbf16>
    %c0_6 = arith.constant 0 : index
    %c0_7 = arith.constant 0 : index
    %9 = vector.load %arg4[%c0_6, %c0_7] : memref<128x128xbf16, #tpu.memory_space<vmem>>, vector<128x128xbf16>
    %cst_8 = arith.constant dense<0.000000e+00> : vector<128x128xf32>
    %10 = tpu.matmul %8, %9, %cst_8 {dimension_numbers = #tpu.dot_dimension_numbers<[1], [0], [0], [1], [0, 0, 1, 1], [], []>} : vector<128x128xbf16>, vector<128x128xbf16>, vector<128x128xf32> -> vector<128x128xf32>
    %c0_9 = arith.constant 0 : index
    %c0_10 = arith.constant 0 : index
    %11 = vector.load %arg5[%c0_9, %c0_10] : memref<1x128xf32, #tpu.memory_space<vmem>>, vector<1x128xf32>
    %12 = vector.broadcast %11 : vector<1x128xf32> to vector<128x128xf32>
    %13 = arith.addf %10, %12 : vector<128x128xf32>
    %cst_11 = arith.constant 0.000000e+00 : f32
    %14 = vector.broadcast %cst_11 : f32 to vector<128x128xf32>
    %15 = arith.maximumf %13, %14 : vector<128x128xf32>
    %c0_12 = arith.constant 0 : index
    %c0_13 = arith.constant 0 : index
    %16 = vector.load %arg6[%c0_12, %c0_13] : memref<1x128xf32, #tpu.memory_space<vmem>>, vector<1x128xf32>
    %17 = vector.broadcast %16 : vector<1x128xf32> to vector<128x128xf32>
    %18 = arith.mulf %15, %17 : vector<128x128xf32>
    %cst_14 = arith.constant dense<0.000000e+00> : vector<128xf32>
    %19 = vector.multi_reduction <add>, %18, %cst_14 [1] : vector<128x128xf32> to vector<128xf32>
    %20 = vector.shape_cast %19 : vector<128xf32> to vector<128x1xf32>
    %c0_15 = arith.constant 0 : index
    %c0_16 = arith.constant 0 : index
    %21 = memref.load %arg7[%c0_15, %c0_16] : memref<1x1xf32, #tpu.memory_space<smem>>
    %22 = vector.broadcast %21 : f32 to vector<128x1xf32>
    %23 = arith.addf %20, %22 : vector<128x1xf32>
    %c0_17 = arith.constant 0 : index
    %c0_18 = arith.constant 0 : index
    %24 = vector.load %arg8[%c0_17, %c0_18] : memref<128x1xf32, #tpu.memory_space<vmem>>, vector<128x1xf32>
    tpu.vector_store %arg8[%c0_17, %c0_18], %23 {strides = array<i32>} : memref<128x1xf32, #tpu.memory_space<vmem>>, vector<128x1xf32>,
    return
  }
  func.func @transform_0(%arg0: i32) -> (i32, i32) {
    %c0_i32 = arith.constant 0 : i32
    %c0_i32_0 = arith.constant 0 : i32
    return %arg0, %c0_i32 : i32, i32
  }
  func.func @transform_1(%arg0: i32) -> (i32, i32) {
    %c0_i32 = arith.constant 0 : i32
    %c0_i32_0 = arith.constant 0 : i32
    %c0_i32_1 = arith.constant 0 : i32
    return %c0_i32, %c0_i32_0 : i32, i32
  }
  func.func @transform_2(%arg0: i32) -> (i32, i32) {
    %c0_i32 = arith.constant 0 : i32
    %c0_i32_0 = arith.constant 0 : i32
    %c0_i32_1 = arith.constant 0 : i32
    return %c0_i32, %c0_i32_0 : i32, i32
  }
  func.func @transform_3(%arg0: i32) -> (i32, i32) {
    %c0_i32 = arith.constant 0 : i32
    %c0_i32_0 = arith.constant 0 : i32
    %c0_i32_1 = arith.constant 0 : i32
    return %c0_i32, %c0_i32_0 : i32, i32
  }
  func.func @transform_4(%arg0: i32) -> (i32, i32) {
    %c0_i32 = arith.constant 0 : i32
    %c0_i32_0 = arith.constant 0 : i32
    %c0_i32_1 = arith.constant 0 : i32
    return %c0_i32, %c0_i32_0 : i32, i32
  }
  func.func @transform_5(%arg0: i32) -> (i32, i32) {
    %c0_i32 = arith.constant 0 : i32
    %c0_i32_0 = arith.constant 0 : i32
    %c0_i32_1 = arith.constant 0 : i32
    return %c0_i32, %c0_i32_0 : i32, i32
  }
  func.func @transform_6(%arg0: i32) -> (i32, i32) {
    %c0_i32 = arith.constant 0 : i32
    %c0_i32_0 = arith.constant 0 : i32
    %c0_i32_1 = arith.constant 0 : i32
    return %c0_i32, %c0_i32_0 : i32, i32
  }
  func.func @transform_7(%arg0: i32) -> (i32, i32) {
    %c0_i32 = arith.constant 0 : i32
    %c0_i32_0 = arith.constant 0 : i32
    return %arg0, %c0_i32 : i32, i32
  }
}

</mosaic_0001>

<bundles_post_ra>
// kernel: energy_dnn_forward.1
= control target key start
LH: loop header
LB: loop body
LE: loop exit
PB: predicated region body
PF: predicated region fallthrough
CT: control target
= control target key end

     0   :  { %s1050_s26 = smov 0   ;;  %s1198_s0 = inlined_call_operand.vmem [shape: bf16[256,32], index: 0, kind: input, shape index: {}]   ;;  %s1199_s1 = inlined_call_operand.vmem [shape: bf16[32,128], index: 1, kind: input, shape index: {}]   ;;  %s1200_s2 = inlined_call_operand.vmem [shape: f32[1,128], index: 2, kind: input, shape index: {}]   ;;  %s1201_s3 = inlined_call_operand.vmem [shape: bf16[128,128], index: 3, kind: input, shape index: {}]   ;;  %s1202_s4 = inlined_call_operand.vmem [shape: f32[1,128], index: 4, kind: input, shape index: {}]   ;;  %s1203_s5 = inlined_call_operand.vmem [shape: f32[1,128], index: 5, kind: input, shape index: {}]   ;;  %s1204_s6 = inlined_call_operand.<no memory space> [shape: f32[1,1], index: 6, kind: input, shape index: {}]   ;;  %s1205_s7 = inlined_call_operand.vmem [shape: f32[256,1], index: 7, kind: output, shape index: {}]  }
   0x1   :  { %12 = sst [smem:[#allocation2]] %s1204_s6 }
   0x2 LB: > { %s839_s27 = sadd.s32 4294967295, %s1005_s26   ;;  %p843_p0 = scmp.ge.s32.totalorder %s1005_s26, 1  ;;  %s1005_s26 = sphi %s1050_s26, %s18_s26  }
   0x3   : > { %p239_p1 = scmp.lt.s32.totalorder %s1005_s26, 3 }
   0x5   : > { %p240_p2 = pnand %p843_p0, %p239_p1 }
   0x6   : > { %v981_v0 = vld [vmem:[%s1199_s1] sm:$0xff] (!%p240_p2)   ;;  %s844_s6 = sshll.u32 (!%p240_p2), %s839_s27, 4  ;;  %v982_v1 = vld [vmem:[%s1199_s1 + $0x8] sm:$0xff] (!%p240_p2)   ;;  %vm363_vm0 = vcmask (!%p240_p2), 261120   ;;  %v993_v4 = vld [vmem:[%s1201_s3 + $0x10] sm:$0xff] (!%p240_p2)   ;;  %vm766_vm1 = vcmask (!%p240_p2), 7168  }
   0x7   : > { %243 = sbr.rel (%p240_p2) target bundleno = 635 (0x27b), region = 48  ;;  %p272_p3 = scmp.lt.s32.totalorder (!%p240_p2), %s844_s6, 31  ;;  %905 = vmatprep.subr.bf16.mxu0 (!%p240_p2), %v981_v0  ;;  %v991_v2 = vld [vmem:[%s1201_s3] sm:$0xff] (!%p240_p2)   ;;  %v992_v3 = vld [vmem:[%s1201_s3 + $0x8] sm:$0xff] (!%p240_p2)   ;;  %v994_v8 = vld [vmem:[%s1201_s3 + $0x18] sm:$0xff] (!%p240_p2)  }
   0x8   : > { %906 = vmatpush3.bf16.msra.mxu0 (!%p240_p2), %v981_v0  ;;  %957 = vmatprep.subr.bf16.mxu1 (!%p240_p2), %v991_v2  ;;  %v995_v10 = vld [vmem:[%s1201_s3 + $0x20] sm:$0xff] (!%p240_p2)   ;;  %v996_v12 = vld [vmem:[%s1201_s3 + $0x28] sm:$0xff] (!%p240_p2)   ;;  %v997_v16 = vld [vmem:[%s1201_s3 + $0x30] sm:$0xff] (!%p240_p2)  }
   0x9   : > { %907 = vmatprep.subr.bf16.mxu0 (!%p240_p2), %v982_v1  ;;  %965 = vmatpush3.bf16.msra.mxu1 (!%p240_p2), %v991_v2  ;;  %v998_v17 = vld [vmem:[%s1201_s3 + $0x38] sm:$0xff] (!%p240_p2)   ;;  %v848_v18 = vld [vmem:[%s1200_s2] ss:$0 sm:$0xff] (!%p240_p2) }
   0xa   : > { %958 = vmatprep.subr.bf16.mxu1 (!%p240_p2), %v992_v3 }
   0xc   : > { %908 = vmatpush3.bf16.msra.mxu0 (!%p240_p2), %v982_v1 }
   0xd   : > { %925 = vmatprep.subr.bf16.mxu0 (!%p240_p2), %v991_v2  ;;  %966 = vmatpush3.bf16.msra.mxu1 (!%p240_p2), %v992_v3 }
   0xe   : > { %s1207_s6 = smov (!%p272_p3, %s844_s6), 31  ;;  %959 = vmatprep.subr.bf16.mxu1 %v993_v4 }
   0xf   : > { %s845_s13 = sshll.u32 %s1207_s6, 2  ;;  %s847_s14 = sshll.u32 %s1207_s6, 3 }
  0x10   : > { %s1076_s16 = scalar_lea.vmem %s1198_s0, %s845_s13  ;;  %s748_s13 = sld [smem:[#allocation2]] }
  0x11   : > { %v983_v5 = vld [vmem:[%s1076_s16] sm:$0xff]   ;;  %v984_v6 = vld [vmem:[%s1076_s16 + $0x8] sm:$0xff]   ;;  %v985_v7 = vld [vmem:[%s1076_s16 + $0x10] sm:$0xff]   ;;  %967 = vmatpush3.bf16.msra.mxu1 %v993_v4  ;;  %s1161_s17 = scalar_lea.vmem %s1205_s7, %s847_s14 }
  0x12   : > { %909 = vmatprep.mubr.msk.bf16.mxu0 %vm363_vm0, %v983_v5  ;;  %v986_v9 = vld [vmem:[%s1076_s16 + $0x18] sm:$0xff]   ;;  %960 = vmatprep.subr.bf16.mxu1 %v994_v8  ;;  %v987_v11 = vld [vmem:[%s1076_s16 + $0x20] sm:$0xff]   ;;  %v988_v13 = vld [vmem:[%s1076_s16 + $0x28] sm:$0xff]  }
  0x13   : > { %910 = vmatmul.mubr.msk.bf16.vlgmr.msra.gmra.mrb[0].mxu0 %vm363_vm0, %v984_v6  ;;  %v989_v14 = vld [vmem:[%s1076_s16 + $0x30] sm:$0xff]   ;;  %v990_v15 = vld [vmem:[%s1076_s16 + $0x38] sm:$0xff]  }
  0x14   : > { %913 = vmatprep.mubr.msk.bf16.mxu0 %vm363_vm0, %v985_v7  ;;  %926 = vmatpush3.bf16.msra.mxu0 %v991_v2 }
  0x15   : > { %927 = vmatprep.subr.bf16.mxu0 %v992_v3  ;;  %968 = vmatpush3.bf16.msra.mxu1 %v994_v8 }
  0x16   : > { %961 = vmatprep.subr.bf16.mxu1 %v995_v10 }
  0x18   : > { %928 = vmatpush3.bf16.msra.mxu0 %v992_v3 }
  0x19   : > { %929 = vmatprep.subr.bf16.mxu0 %v993_v4  ;;  %969 = vmatpush3.bf16.msra.mxu1 %v995_v10 }
  0x1a   : > { %962 = vmatprep.subr.bf16.mxu1 %v996_v12 }
  0x1b   : > { %914 = vmatmul.mubr.msk.bf16.gmra.mrb[4].mxu0 %vm363_vm0, %v986_v9 }
  0x1c   : > { %917 = vmatprep.mubr.msk.bf16.mxu0 %vm363_vm0, %v987_v11  ;;  %930 = vmatpush3.bf16.msra.mxu0 %v993_v4  ;;  %v1118_v11 = vld [vmem:[%s1202_s4] ss:$0 sm:$0xff] }
  0x1d   : > { %931 = vmatprep.subr.bf16.mxu0 %v994_v8  ;;  %970 = vmatpush3.bf16.msra.mxu1 %v996_v12 }
  0x1e   : > { %963 = vmatprep.subr.bf16.mxu1 %v997_v16 }
  0x20   : > { %932 = vmatpush3.bf16.msra.mxu0 %v994_v8 }
  0x21   : > { %933 = vmatprep.subr.bf16.mxu0 %v995_v10  ;;  %971 = vmatpush3.bf16.msra.mxu1 %v997_v16 }
  0x22   : > { %964 = vmatprep.subr.bf16.mxu1 %v998_v17 }
  0x23   : > { %918 = vmatmul.mubr.msk.bf16.gmra.mrb[8].mxu0 %vm363_vm0, %v988_v13 }
  0x24   : > { %921 = vmatprep.mubr.msk.bf16.mxu0 %vm363_vm0, %v989_v14  ;;  %934 = vmatpush3.bf16.msra.mxu0 %v995_v10 }
  0x25   : > { %935 = vmatprep.subr.bf16.mxu0 %v996_v12  ;;  %972 = vmatpush3.bf16.msra.mxu1 %v998_v17 }
  0x28   : > { %936 = vmatpush3.bf16.msra.mxu0 %v996_v12 }
  0x29   : > { %937 = vmatprep.subr.bf16.mxu0 %v997_v16 }
  0x2b   : > { %922 = vmatmul.mubr.msk.bf16.gmra.mrb[12].mxu0 %vm363_vm0, %v990_v15 }
  0x2c   : > { %938 = vmatpush3.bf16.msra.mxu0 %v997_v16 }
  0x2d   : > { %939 = vmatprep.subr.bf16.mxu0 %v998_v17 }
  0x30   : > { %940 = vmatpush3.bf16.msra.mxu0 %v998_v17  ;;  %v1125_v17 = vld [vmem:[%s1203_s5] ss:$0 sm:$0xff] }
  0xe6   : > { %v911_v19 = vpop.f32.mrb[0].mxu0 }
  0xe7   : > { %v431_v20 = vadd.f32 %v911_v19, %v848_v18  ;;  %v422_v21 = vpop.f32.mrb[1].mxu0 }
  0xe8   : > { %v423_v22 = vadd.f32 %v848_v18, %v422_v21  ;;  %v912_v23 = vpop.f32.mrb[2].mxu0 }
  0xe9   : > { %v434_v24 = vadd.f32 %v912_v23, %v848_v18  ;;  %v425_v25 = vpop.f32.mrb[3].mxu0  ;;  %v487_v27 = vmax.f32 %v431_v20, 0.0 }
  0xea   : > { %v426_v26 = vadd.f32 %v848_v18, %v425_v25  ;;  %v485_v29 = vmax.f32 %v423_v22, 0.0 }
  0xeb   : > { %v488_v28 = vmax.f32 %v434_v24, 0.0 }
  0xec   : > { %v486_v30 = vmax.f32 %v426_v26, 0.0 }
  0xed   : > { %v502_v31 = vpack.c.bf16 %v488_v28, %v487_v27 }
  0xee   : > { %v501_v32 = vpack.c.bf16 %v486_v30, %v485_v29  ;;  %v915_v33 = vpop.f32.mrb[4].mxu0 }
  0xef   : > { %v447_v34 = vadd.f32 %v915_v33, %v848_v18  ;;  %v438_v35 = vpop.f32.mrb[5].mxu0 }
  0xf0   : > { %v439_v36 = vadd.f32 %v848_v18, %v438_v35  ;;  %v916_v37 = vpop.f32.mrb[6].mxu0  ;;  %941 = vmatprep.mubr.bf16.mxu0 %v501_v32 }
  0xf1   : > { %v450_v38 = vadd.f32 %v916_v37, %v848_v18  ;;  %v441_v39 = vpop.f32.mrb[7].mxu0  ;;  %942 = vmatmul.mubr.bf16.vlgmr.msra.gmra.mrb[16].mxu0 %v502_v31  ;;  %v491_v41 = vmax.f32 %v447_v34, 0.0 }
  0xf2   : > { %v442_v40 = vadd.f32 %v848_v18, %v441_v39  ;;  %v489_v43 = vmax.f32 %v439_v36, 0.0 }
  0xf3   : > { %v492_v42 = vmax.f32 %v450_v38, 0.0 }
  0xf4   : > { %v490_v44 = vmax.f32 %v442_v40, 0.0 }
  0xf5   : > { %v504_v45 = vpack.c.bf16 %v492_v42, %v491_v41 }
  0xf6   : > { %v919_v46 = vpop.f32.mrb[8].mxu0  ;;  %v503_v47 = vpack.c.bf16 %v490_v44, %v489_v43 }
  0xf7   : > { %v463_v48 = vadd.f32 %v919_v46, %v848_v18  ;;  %v454_v49 = vpop.f32.mrb[9].mxu0 }
  0xf8   : > { %v455_v50 = vadd.f32 %v848_v18, %v454_v49  ;;  %v920_v51 = vpop.f32.mrb[10].mxu0  ;;  %945 = vmatprep.mubr.bf16.mxu1 %v503_v47 }
  0xf9   : > { %v466_v52 = vadd.f32 %v920_v51, %v848_v18  ;;  %v457_v53 = vpop.f32.mrb[11].mxu0  ;;  %946 = vmatmul.mubr.bf16.vlgmr.msra.gmra.mrb[0].mxu1 %v504_v45  ;;  %v495_v55 = vmax.f32 %v463_v48, 0.0 }
  0xfa   : > { %v458_v54 = vadd.f32 %v848_v18, %v457_v53  ;;  %v493_v57 = vmax.f32 %v455_v50, 0.0 }
  0xfb   : > { %v496_v56 = vmax.f32 %v466_v52, 0.0 }
  0xfc   : > { %v494_v58 = vmax.f32 %v458_v54, 0.0 }
  0xfd   : > { %v506_v59 = vpack.c.bf16 %v496_v56, %v495_v55 }
  0xfe   : > { %v505_v60 = vpack.c.bf16 %v494_v58, %v493_v57  ;;  %v923_v61 = vpop.f32.mrb[12].mxu0 }
  0xff   : > { %v479_v62 = vadd.f32 %v923_v61, %v848_v18  ;;  %v470_v63 = vpop.f32.mrb[13].mxu0 }
 0x100   : > { %v471_v0 = vadd.f32 %v848_v18, %v470_v63  ;;  %v924_v1 = vpop.f32.mrb[14].mxu0  ;;  %949 = vmatprep.mubr.bf16.mxu1 %v505_v60 }
 0x101   : > { %v482_v2 = vadd.f32 %v924_v1, %v848_v18  ;;  %v473_v3 = vpop.f32.mrb[15].mxu0  ;;  %950 = vmatmul.mubr.bf16.gmra.mrb[4].mxu1 %v506_v59  ;;  %v499_v5 = vmax.f32 %v479_v62, 0.0 }
 0x102   : > { %v474_v4 = vadd.f32 %v848_v18, %v473_v3  ;;  %v497_v7 = vmax.f32 %v471_v0, 0.0 }
 0x103   : > { %v500_v6 = vmax.f32 %v482_v2, 0.0 }
 0x104   : > { %v498_v8 = vmax.f32 %v474_v4, 0.0 }
 0x105   : > { %v508_v9 = vpack.c.bf16 %v500_v6, %v499_v5 }
 0x106   : > { %v507_v10 = vpack.c.bf16 %v498_v8, %v497_v7 }
 0x108   : > { %953 = vmatprep.mubr.bf16.mxu1 %v507_v10 }
 0x109   : > { %954 = vmatmul.mubr.bf16.gmra.mrb[8].mxu1 %v508_v9 }
 0x1c4   : > { %v943_v12 = vpop.f32.mrb[16].mxu0 }
 0x1c5   : > { %v623_v13 = vadd.f32 %v943_v12, %v1118_v11  ;;  %v614_v14 = vpop.f32.mrb[17].mxu0 }
 0x1c6   : > { %v615_v15 = vadd.f32 %v1118_v11, %v614_v14  ;;  %v944_v16 = vpop.f32.mrb[18].mxu0 }
 0x1c7   : > { %v679_v18 = vmax.f32 %v623_v13, 0.0  ;;  %v626_v19 = vadd.f32 %v944_v16, %v1118_v11  ;;  %v617_v20 = vpop.f32.mrb[19].mxu0 }
 0x1c8   : > { %v677_v21 = vmax.f32 %v615_v15, 0.0  ;;  %v618_v22 = vadd.f32 %v1118_v11, %v617_v20 }
 0x1c9   : > { %v680_v23 = vmax.f32 %v626_v19, 0.0  ;;  %v702_v24 = vmul.f32 %v1125_v17, %v679_v18 }
 0x1ca   : > { %v678_v25 = vmax.f32 %v618_v22, 0.0  ;;  %v700_v26 = vmul.f32 %v1125_v17, %v677_v21 }
 0x1cb   : > { %720 = vadd.xlane.f32.xlu1 %v702_v24  ;;  %v703_v30 = vmul.f32 %v1125_v17, %v680_v23 }
 0x1cc   : > { %v947_v27 = vpop.f32.mrb[0].mxu1  ;;  %716 = vadd.xlane.f32.xlu0 %v700_v26  ;;  %v701_v33 = vmul.f32 %v1125_v17, %v678_v25 }
 0x1cd   : > { %v639_v28 = vadd.f32 %v947_v27, %v1118_v11  ;;  %v630_v29 = vpop.f32.mrb[1].mxu1 }
 0x1ce   : > { %v631_v31 = vadd.f32 %v1118_v11, %v630_v29  ;;  %v948_v32 = vpop.f32.mrb[2].mxu1 }
 0x1cf   : > { %v683_v34 = vmax.f32 %v639_v28, 0.0  ;;  %v642_v35 = vadd.f32 %v948_v32, %v1118_v11  ;;  %v633_v36 = vpop.f32.mrb[3].mxu1  ;;  %722 = vadd.xlane.f32.xlu1 %v703_v30 }
 0x1d0   : > { %v634_v37 = vadd.f32 %v1118_v11, %v633_v36  ;;  %718 = vadd.xlane.f32.xlu0 %v701_v33  ;;  %v681_v40 = vmax.f32 %v631_v31, 0.0 }
 0x1d1   : > { %v684_v38 = vmax.f32 %v642_v35, 0.0  ;;  %v706_v39 = vmul.f32 %v1125_v17, %v683_v34 }
 0x1d2   : > { %v682_v41 = vmax.f32 %v634_v37, 0.0  ;;  %v704_v48 = vmul.f32 %v1125_v17, %v681_v40 }
 0x1d3   : > { %v707_v42 = vmul.f32 %v1125_v17, %v684_v38 }
 0x1d4   : > { %v951_v43 = vpop.f32.mrb[4].mxu1  ;;  %728 = vadd.xlane.f32.xlu0 %v706_v39  ;;  %v705_v52 = vmul.f32 %v1125_v17, %v682_v41 }
 0x1d5   : > { %v655_v44 = vadd.f32 %v951_v43, %v1118_v11  ;;  %v646_v45 = vpop.f32.mrb[5].mxu1  ;;  %730 = vadd.xlane.f32.xlu1 %v707_v42 }
 0x1d6   : > { %v647_v46 = vadd.f32 %v1118_v11, %v646_v45  ;;  %v952_v47 = vpop.f32.mrb[6].mxu1 }
 0x1d7   : > { %v687_v49 = vmax.f32 %v655_v44, 0.0  ;;  %v658_v50 = vadd.f32 %v952_v47, %v1118_v11  ;;  %v649_v51 = vpop.f32.mrb[7].mxu1 }
 0x1d8   : > { %v650_v53 = vadd.f32 %v1118_v11, %v649_v51  ;;  %724 = vadd.xlane.f32.xlu0 %v704_v48  ;;  %v685_v56 = vmax.f32 %v647_v46, 0.0 }
 0x1d9   : > { %v688_v54 = vmax.f32 %v658_v50, 0.0  ;;  %726 = vadd.xlane.f32.xlu1 %v705_v52  ;;  %v710_v55 = vmul.f32 %v1125_v17, %v687_v49 }
 0x1da   : > { %v686_v57 = vmax.f32 %v650_v53, 0.0  ;;  %v708_v0 = vmul.f32 %v1125_v17, %v685_v56 }
 0x1db   : > { %v711_v58 = vmul.f32 %v1125_v17, %v688_v54 }
 0x1dc   : > { %v955_v59 = vpop.f32.mrb[8].mxu1  ;;  %736 = vadd.xlane.f32.xlu0 %v710_v55  ;;  %v709_v2 = vmul.f32 %v1125_v17, %v686_v57 }
 0x1dd   : > { %v662_v60 = vpop.f32.mrb[9].mxu1  ;;  %738 = vadd.xlane.f32.xlu1 %v711_v58  ;;  %v671_v61 = vadd.f32 %v955_v59, %v1118_v11 }
 0x1de   : > { %v663_v62 = vadd.f32 %v1118_v11, %v662_v60  ;;  %v956_v63 = vpop.f32.mrb[10].mxu1 }
 0x1df   : > { %v665_v1 = vpop.f32.mrb[11].mxu1  ;;  %v674_v4 = vadd.f32 %v956_v63, %v1118_v11  ;;  %v691_v6 = vmax.f32 %v671_v61, 0.0 }
 0x1e0   : > { %v689_v3 = vmax.f32 %v663_v62, 0.0  ;;  %v666_v5 = vadd.f32 %v1118_v11, %v665_v1  ;;  %732 = vadd.xlane.f32.xlu0 %v708_v0  ;;  %v749_v11 = vstv %s748_s13 }
 0x1e1   : > { %734 = vadd.xlane.f32.xlu1 %v709_v2  ;;  %v692_v9 = vmax.f32 %v674_v4, 0.0  ;;  %v714_v12 = vmul.f32 %v1125_v17, %v691_v6 }
 0x1e2   : > { %v690_v7 = vmax.f32 %v666_v5, 0.0  ;;  %v712_v8 = vmul.f32 %v1125_v17, %v689_v3 }
 0x1e3   : > { %v715_v13 = vmul.f32 %v1125_v17, %v692_v9 }
 0x1e4   : > { %740 = vadd.xlane.f32.xlu0 %v712_v8  ;;  %v713_v10 = vmul.f32 %v1125_v17, %v690_v7 }
 0x1e6   : > { %742 = vadd.xlane.f32.xlu1 %v713_v10 }
 0x1e8   : > { %744 = vadd.xlane.f32.xlu0 %v714_v12 }
 0x1ea   : > { %746 = vadd.xlane.f32.xlu1 %v715_v13 }
 0x258   : > { %v721_v14 = vpop.xlane.xlu1 %720 }
 0x259   : > { %v752_v15 = vadd.f32 %v749_v11, %v721_v14  ;;  %v717_v16 = vpop.xlane.xlu0 %716 }
 0x25a   : > { %v750_v17 = vadd.f32 %v749_v11, %v717_v16 }
 0x25b   : > { %769 = vst.msk [vmem:[%s1161_s17 + $0x10] sm:$0xff] %vm766_vm1, %v752_v15 }
 0x25c   : > { %767 = vst.msk [vmem:[%s1161_s17] sm:$0xff] %vm766_vm1, %v750_v17  ;;  %v723_v18 = vpop.xlane.xlu1 %722 }
 0x25d   : > { %v753_v19 = vadd.f32 %v749_v11, %v723_v18  ;;  %v719_v20 = vpop.xlane.xlu0 %718 }
 0x25e   : > { %v751_v21 = vadd.f32 %v749_v11, %v719_v20 }
 0x25f   : > { %770 = vst.msk [vmem:[%s1161_s17 + $0x18] sm:$0xff] %vm766_vm1, %v753_v19 }
 0x260   : > { %768 = vst.msk [vmem:[%s1161_s17 + $0x8] sm:$0xff] %vm766_vm1, %v751_v21 }
 0x261   : > { %v729_v22 = vpop.xlane.xlu0 %728 }
 0x262   : > { %v756_v23 = vadd.f32 %v749_v11, %v729_v22  ;;  %v731_v24 = vpop.xlane.xlu1 %730 }
 0x263   : > { %v757_v25 = vadd.f32 %v749_v11, %v731_v24 }
 0x264   : > { %773 = vst.msk [vmem:[%s1161_s17 + $0x30] sm:$0xff] %vm766_vm1, %v756_v23 }
 0x265   : > { %774 = vst.msk [vmem:[%s1161_s17 + $0x38] sm:$0xff] %vm766_vm1, %v757_v25  ;;  %v725_v26 = vpop.xlane.xlu0 %724 }
 0x266   : > { %v754_v27 = vadd.f32 %v749_v11, %v725_v26  ;;  %v727_v28 = vpop.xlane.xlu1 %726 }
 0x267   : > { %v755_v29 = vadd.f32 %v749_v11, %v727_v28 }
 0x268   : > { %771 = vst.msk [vmem:[%s1161_s17 + $0x20] sm:$0xff] %vm766_vm1, %v754_v27 }
 0x269   : > { %772 = vst.msk [vmem:[%s1161_s17 + $0x28] sm:$0xff] %vm766_vm1, %v755_v29  ;;  %v737_v30 = vpop.xlane.xlu0 %736 }
 0x26a   : > { %v760_v31 = vadd.f32 %v749_v11, %v737_v30  ;;  %v739_v32 = vpop.xlane.xlu1 %738 }
 0x26b   : > { %v761_v33 = vadd.f32 %v749_v11, %v739_v32 }
 0x26c   : > { %777 = vst.msk [vmem:[%s1161_s17 + $0x50] sm:$0xff] %vm766_vm1, %v760_v31 }
 0x26d   : > { %778 = vst.msk [vmem:[%s1161_s17 + $0x58] sm:$0xff] %vm766_vm1, %v761_v33  ;;  %v733_v34 = vpop.xlane.xlu0 %732 }
 0x26e   : > { %v758_v35 = vadd.f32 %v749_v11, %v733_v34  ;;  %v735_v36 = vpop.xlane.xlu1 %734 }
 0x26f   : > { %v759_v37 = vadd.f32 %v749_v11, %v735_v36 }
 0x270   : > { %775 = vst.msk [vmem:[%s1161_s17 + $0x40] sm:$0xff] %vm766_vm1, %v758_v35 }
 0x271   : > { %776 = vst.msk [vmem:[%s1161_s17 + $0x48] sm:$0xff] %vm766_vm1, %v759_v37  ;;  %v741_v38 = vpop.xlane.xlu0 %740 }
 0x272   : > { %v762_v39 = vadd.f32 %v749_v11, %v741_v38 }
 0x273   : > { %v743_v40 = vpop.xlane.xlu1 %742 }
 0x274   : > { %779 = vst.msk [vmem:[%s1161_s17 + $0x60] sm:$0xff] %vm766_vm1, %v762_v39  ;;  %v763_v41 = vadd.f32 %v749_v11, %v743_v40 }
 0x275   : > { %v745_v42 = vpop.xlane.xlu0 %744 }
 0x276   : > { %780 = vst.msk [vmem:[%s1161_s17 + $0x68] sm:$0xff] %vm766_vm1, %v763_v41  ;;  %v764_v43 = vadd.f32 %v749_v11, %v745_v42 }
 0x277   : > { %v747_v44 = vpop.xlane.xlu1 %746 }
 0x278   : > { %781 = vst.msk [vmem:[%s1161_s17 + $0x70] sm:$0xff] %vm766_vm1, %v764_v43  ;;  %v765_v45 = vadd.f32 %v749_v11, %v747_v44 }
 0x27a   : > { %782 = vst.msk [vmem:[%s1161_s17 + $0x78] sm:$0xff] %vm766_vm1, %v765_v45 }
 0x27b PF: > { %s18_s26 = sadd.s32 1, %s1005_s26  }
 0x27c   : > { %p15_p4 = scmp.ge.s32.totalorder %s18_s26, 4  }
 0x27e   :  { %17 = sbr.rel (!%p15_p4) target bundleno = 2 (0x2), region = 78 }

</bundles_post_ra>
